<compile_context>
chip_gen: v7x
topology: tpu7x:2x2x1
jax: 0.10.0
libtpu: 0.0.40
codegen_flags: <defaults>
</compile_context>

<pallas_src>
import functools

import jax
import jax.numpy as jnp
from jax.experimental import pallas as pl
from jax.experimental.pallas import tpu as pltpu


# ----------------------------- Pallas kernels -----------------------------

def _generator_kernel(x_ref, wg1_ref, bg1_ref, wg2_ref, bg2_ref, ew_ref,
                      emb_ref, word_ref, plog_ref):
    """Fused generator: MLP -> logits (once) -> softmax / argmax / plog /
    soft embedding, all while the [TILE_M, V] logits tile stays in VMEM."""
    f32 = jnp.float32
    h = jnp.tanh(jnp.dot(x_ref[...], wg1_ref[...], preferred_element_type=f32)
                 + bg1_ref[...])
    # vocab logits: bf16 MXU operands, f32 accumulation -- computed ONCE.
    logits = (jnp.dot(h.astype(wg2_ref.dtype), wg2_ref[...],
                      preferred_element_type=f32) + bg2_ref[...])
    v = logits.shape[-1]
    m = jnp.max(logits, axis=-1, keepdims=True)
    e = jnp.exp(logits - m)
    denom = jnp.sum(e, axis=-1, keepdims=True)
    probs = e / denom
    # expected (soft) embedding of the obfuscated word
    emb_ref[...] = jnp.dot(probs.astype(ew_ref.dtype), ew_ref[...],
                           preferred_element_type=f32)
    # greedy obfuscated word = argmax(logits) (first max index) and its
    # log-probability: plog = logits[argmax] - logsumexp = -log(denom)
    iota = jax.lax.broadcasted_iota(jnp.int32, logits.shape, 1).astype(f32)
    amax = jnp.min(jnp.where(logits == m, iota, float(v)),
                   axis=-1, keepdims=True)
    word_ref[...] = amax.astype(jnp.int32)
    plog_ref[...] = -jnp.log(denom)


def _parser_kernel(x_ref, arcs_ref, rels_ref,
                   wenc_ref, benc_ref, wh_ref, bh_ref,
                   wa_ref, uad_ref, uah_ref, ca_ref,
                   wr_ref, urd_ref, urh_ref, cr_ref,
                   nll_ref, pred_ref,
                   *, d_arc, d_rel, n_rels, use_gold_heads):
    """Fused parser (one batch element per grid step): encoder MLP, fused
    4-way head projection, decomposed arc/rel biaffines, head gather, CE."""
    f32 = jnp.float32
    x = x_ref[...]                                   # [S, Din]
    S = x.shape[0]

    h = jnp.tanh(jnp.dot(x, wenc_ref[...], preferred_element_type=f32)
                 + benc_ref[...])
    heads = jnp.tanh(jnp.dot(h, wh_ref[...], preferred_element_type=f32)
                     + bh_ref[...])                  # [S, 2*d_arc + 2*d_rel]
    arc_dep = heads[:, :d_arc]
    arc_head = heads[:, d_arc:2 * d_arc]
    rel_dep = heads[:, 2 * d_arc:2 * d_arc + d_rel]
    rel_head = heads[:, 2 * d_arc + d_rel:2 * d_arc + 2 * d_rel]

    # ---- arc biaffine, decomposed (exact rewrite of the +1-augmented form) --
    t_arc = jnp.dot(arc_dep, wa_ref[...], preferred_element_type=f32)
    bil_arc = jax.lax.dot_general(t_arc, arc_head, (((1,), (1,)), ((), ())),
                                  preferred_element_type=f32)          # [S, S]
    dep_b = jnp.dot(arc_dep, uad_ref[...], preferred_element_type=f32)  # [S, 1]
    head_b = jax.lax.dot_general(uah_ref[...], arc_head,
                                 (((1,), (1,)), ((), ())),
                                 preferred_element_type=f32)           # [1, S]
    s_arc = bil_arc + dep_b + head_b + ca_ref[...]                     # [S, S]

    # ---- arc cross entropy (per row) + greedy arc prediction ----------------
    arcs_col = arcs_ref[...]                                           # [S, 1]
    iota_j = jax.lax.broadcasted_iota(jnp.int32, (S, S), 1)
    onehot_gold = (iota_j == arcs_col).astype(f32)
    m_a = jnp.max(s_arc, axis=-1, keepdims=True)
    lse_a = m_a + jnp.log(jnp.sum(jnp.exp(s_arc - m_a), axis=-1, keepdims=True))
    arc_nll = lse_a - jnp.sum(s_arc * onehot_gold, axis=-1, keepdims=True)
    pred_arcs = jnp.min(
        jnp.where(s_arc == m_a, iota_j.astype(f32), float(S)),
        axis=-1, keepdims=True).astype(jnp.int32)                      # [S, 1]

    # ---- gather rel_head rows at the selected heads via one-hot matmul ------
    if use_gold_heads:
        sel = onehot_gold
    else:
        sel = (iota_j == pred_arcs).astype(f32)
    rel_head_sel = jnp.dot(sel, rel_head, preferred_element_type=f32)  # [S, d_rel]

    # ---- rel biaffine at the selected heads, all relations in one matmul ----
    t_rel = jnp.dot(rel_dep, wr_ref[...], preferred_element_type=f32)  # [S, R*d_rel]
    cols = []
    for r in range(n_rels):
        seg = t_rel[:, r * d_rel:(r + 1) * d_rel]
        cols.append(jnp.sum(seg * rel_head_sel, axis=-1, keepdims=True))
    bil_rel = jnp.concatenate(cols, axis=-1)                           # [S, R]
    s_rel = (bil_rel
             + jnp.dot(rel_dep, urd_ref[...], preferred_element_type=f32)
             + jnp.dot(rel_head_sel, urh_ref[...], preferred_element_type=f32)
             + cr_ref[...])                                            # [S, R]

    # ---- rel cross entropy (per row) + rel prediction ------------------------
    rels_col = rels_ref[...]                                           # [S, 1]
    iota_r = jax.lax.broadcasted_iota(jnp.int32, (S, n_rels), 1)
    onehot_r = (iota_r == rels_col).astype(f32)
    m_r = jnp.max(s_rel, axis=-1, keepdims=True)
    lse_r = m_r + jnp.log(jnp.sum(jnp.exp(s_rel - m_r), axis=-1, keepdims=True))
    rel_nll = lse_r - jnp.sum(s_rel * onehot_r, axis=-1, keepdims=True)
    pred_rels = jnp.min(
        jnp.where(s_rel == m_r, iota_r.astype(f32), float(n_rels)),
        axis=-1, keepdims=True).astype(jnp.int32)                      # [S, 1]

    nll_ref[...] = jnp.concatenate([arc_nll, rel_nll], axis=-1)        # [S, 2]
    pred_ref[...] = jnp.concatenate([pred_arcs, pred_rels], axis=-1)   # [S, 2]


# ------------------------------ wrappers -----------------------------------

def _pick_tile_m(m_padded):
    """Largest sublane-aligned tile dividing m_padded, preferring >=2 programs."""
    for t in (512, 256, 128, 64, 32, 16, 8):
        if m_padded % t == 0 and m_padded // t >= 2:
            return t
    for t in (512, 256, 128, 64, 32, 16, 8):
        if m_padded % t == 0:
            return t
    return m_padded


def generator_forward(p, word, char, pos):
    """SeqAllGenerator (simplified): context-conditioned distribution over the
    word vocabulary; obf_word_emb is the expected (soft) embedding."""
    B, S = word.shape
    V, d_word = p["E_word"].shape
    d_hid = p["Wg1"].shape[1]

    we = p["E_word"][word]
    pe = p["E_pos"][pos]
    x = jnp.concatenate([we, pe], axis=-1).reshape(B * S, -1).astype(jnp.float32)
    M, Din = x.shape

    Mp = ((M + 7) // 8) * 8
    tm = _pick_tile_m(Mp)
    if Mp != M:
        x = jnp.pad(x, ((0, Mp - M), (0, 0)))

    wg1 = p["Wg1"]
    bg1 = p["bg1"][None, :]
    wg2 = p["Wg2"].astype(jnp.bfloat16)      # bf16 MXU operand, f32 accumulate
    bg2 = p["bg2"][None, :]
    ew = p["E_word"].astype(jnp.bfloat16)

    emb, word_idx, plog = pl.pallas_call(
        _generator_kernel,
        out_shape=(
            jax.ShapeDtypeStruct((Mp, d_word), jnp.float32),
            jax.ShapeDtypeStruct((Mp, 1), jnp.int32),
            jax.ShapeDtypeStruct((Mp, 1), jnp.float32),
        ),
        grid=(Mp // tm,),
        in_specs=[
            pl.BlockSpec((tm, Din), lambda i: (i, 0)),
            pl.BlockSpec((Din, d_hid), lambda i: (0, 0)),
            pl.BlockSpec((1, d_hid), lambda i: (0, 0)),
            pl.BlockSpec((d_hid, V), lambda i: (0, 0)),
            pl.BlockSpec((1, V), lambda i: (0, 0)),
            pl.BlockSpec((V, d_word), lambda i: (0, 0)),
        ],
        out_specs=(
            pl.BlockSpec((tm, d_word), lambda i: (i, 0)),
            pl.BlockSpec((tm, 1), lambda i: (i, 0)),
            pl.BlockSpec((tm, 1), lambda i: (i, 0)),
        ),
        compiler_params=pltpu.CompilerParams(
            dimension_semantics=("parallel",)),
    )(x, wg1, bg1, wg2, bg2, ew)

    emb = emb[:M]
    word_idx = word_idx[:M, 0]
    plog = plog[:M, 0]
    return {
        "obf_word": word_idx.reshape(B, S),
        "obf_word_emb": emb.reshape(B, S, d_word),
        "obf_pos": pos,
        "obf_char": char,
        "obf_mask": jnp.ones((B, S), jnp.float32),
        "plog": plog.reshape(B, S),
    }


def parser_forward(p, word_emb, pos, mask, arcs, rels, use_gold_heads=True):
    """BiaffineAttnParser (simplified encoder): arc & rel biaffine scoring,
    masked cross-entropy losses over gold heads / relations, greedy decode."""
    B, S, _ = word_emb.shape
    d_hid = p["Wenc"].shape[1]
    d_arc = p["Wad"].shape[1]
    d_rel = p["Wrd"].shape[1]
    R = p["Urel"].shape[0]

    pe = p["E_pos"][pos]
    x = jnp.concatenate([word_emb, pe], axis=-1).astype(jnp.float32)  # [B,S,Din]
    Din = x.shape[-1]

    # fused 4-way head-projection weights: one [d_hid, 2*d_arc+2*d_rel] matmul
    wh = jnp.concatenate([p["Wad"], p["Wah"], p["Wrd"], p["Wrh"]], axis=1)
    bh = jnp.concatenate([p["bad"], p["bah"], p["brd"], p["brh"]])[None, :]
    benc = p["benc"][None, :]
    wh_n = wh.shape[1]

    # decomposed biaffine parameters (exact rewrite of the bias-augmented form,
    # keeps every MXU operand at the aligned d_arc / d_rel widths)
    ua = p["Uarc"][0]
    wa = ua[:d_arc, :d_arc]
    uad = ua[:d_arc, d_arc:d_arc + 1]              # [d_arc, 1]
    uah = ua[d_arc:d_arc + 1, :d_arc]              # [1, d_arc]
    ca = ua[d_arc:, d_arc:]                        # [1, 1]

    ur = p["Urel"]                                 # [R, d_rel+1, d_rel+1]
    wr = jnp.transpose(ur[:, :d_rel, :d_rel], (1, 0, 2)).reshape(d_rel, R * d_rel)
    urd = ur[:, :d_rel, d_rel].T                   # [d_rel, R]
    urh = ur[:, d_rel, :d_rel].T                   # [d_rel, R]
    cr = ur[:, d_rel, d_rel][None, :]              # [1, R]

    arcs3 = arcs.astype(jnp.int32)[..., None]      # [B, S, 1]
    rels3 = rels.astype(jnp.int32)[..., None]

    kernel = functools.partial(_parser_kernel, d_arc=d_arc, d_rel=d_rel,
                               n_rels=R, use_gold_heads=use_gold_heads)
    nll, pred = pl.pallas_call(
        kernel,
        out_shape=(
            jax.ShapeDtypeStruct((B, S, 2), jnp.float32),
            jax.ShapeDtypeStruct((B, S, 2), jnp.int32),
        ),
        grid=(B,),
        in_specs=[
            pl.BlockSpec((None, S, Din), lambda b: (b, 0, 0)),
            pl.BlockSpec((None, S, 1), lambda b: (b, 0, 0)),
            pl.BlockSpec((None, S, 1), lambda b: (b, 0, 0)),
            pl.BlockSpec((Din, d_hid), lambda b: (0, 0)),
            pl.BlockSpec((1, d_hid), lambda b: (0, 0)),
            pl.BlockSpec((d_hid, wh_n), lambda b: (0, 0)),
            pl.BlockSpec((1, wh_n), lambda b: (0, 0)),
            pl.BlockSpec((d_arc, d_arc), lambda b: (0, 0)),
            pl.BlockSpec((d_arc, 1), lambda b: (0, 0)),
            pl.BlockSpec((1, d_arc), lambda b: (0, 0)),
            pl.BlockSpec((1, 1), lambda b: (0, 0)),
            pl.BlockSpec((d_rel, R * d_rel), lambda b: (0, 0)),
            pl.BlockSpec((d_rel, R), lambda b: (0, 0)),
            pl.BlockSpec((d_rel, R), lambda b: (0, 0)),
            pl.BlockSpec((1, R), lambda b: (0, 0)),
        ],
        out_specs=(
            pl.BlockSpec((None, S, 2), lambda b: (b, 0, 0)),
            pl.BlockSpec((None, S, 2), lambda b: (b, 0, 0)),
        ),
        compiler_params=pltpu.CompilerParams(
            dimension_semantics=("parallel",)),
    )(x, arcs3, rels3, p["Wenc"], benc, wh, bh, wa, uad, uah, ca,
      wr, urd, urh, cr)

    maskf = mask.astype(jnp.float32)
    denom = jnp.maximum(jnp.sum(maskf), 1.0)
    loss_arc = jnp.sum(nll[..., 0] * maskf) / denom
    loss_rel = jnp.sum(nll[..., 1] * maskf) / denom
    return {
        "loss": loss_arc + loss_rel,
        "loss_arc": loss_arc,
        "loss_rel": loss_rel,
        "arcs": pred[..., 0],
        "rels": pred[..., 1],
    }


def seq_all_obfuscator_forward(p, word, char, pos, mask, length,
                               arcs=None, rels=None):
    """Mirrors SeqAllObfuscator.forward for the arcs-given, reinforce=False path."""
    del length  # only used upstream to build `mask`
    ret = {}
    gen = generator_forward(p, word, char, pos)
    ret["gen_oup"] = gen
    if arcs is not None:
        loss = parser_forward(p, gen["obf_word_emb"], gen["obf_pos"], mask,
                              arcs, rels, use_gold_heads=True)
        ret["loss"] = loss["loss"]
        ret["loss_arc"] = loss["loss_arc"]
        ret["loss_rel"] = loss["loss_rel"]
    else:
        zeros = jnp.zeros_like(word)
        obf_word_emb = p["E_word"][gen["obf_word"]]
        obf_parsed = parser_forward(p, obf_word_emb, gen["obf_pos"], mask,
                                    zeros, zeros, use_gold_heads=False)
        ori_parsed = parser_forward(p, p["E_word"][word], pos, mask,
                                    zeros, zeros, use_gold_heads=False)
        ret["obf_arcs"], ret["obf_rels"] = obf_parsed["arcs"], obf_parsed["rels"]
        ret["ori_arcs"], ret["ori_rels"] = ori_parsed["arcs"], ori_parsed["rels"]
        ret["obf_word"], ret["obf_mask"] = gen["obf_word"], gen["obf_mask"]
    return ret


# --------------------------- parameters (synthetic) ---------------------------

def init_params(key, vocab, n_pos, n_rels,
                d_word=32, d_pos=16, d_hid=32, d_arc=32, d_rel=16):
    ks = jax.random.split(key, 16)
    s = 0.1
    z = lambda n: jnp.zeros((n,), jnp.float32)
    p = {
        "E_word": s * jax.random.normal(ks[0], (vocab, d_word), jnp.float32),
        "E_pos":  s * jax.random.normal(ks[1], (n_pos, d_pos), jnp.float32),
        # generator (SeqAllGenerator, simplified: context MLP -> vocab dist)
        "Wg1": s * jax.random.normal(ks[2], (d_word + d_pos, d_hid), jnp.float32),
        "bg1": z(d_hid),
        "Wg2": s * jax.random.normal(ks[3], (d_hid, vocab), jnp.float32),
        "bg2": z(vocab),
        # parser encoder (token-wise MLP stand-in for char-CNN + BiLSTM)
        "Wenc": s * jax.random.normal(ks[4], (d_word + d_pos, d_hid), jnp.float32),
        "benc": z(d_hid),
        # biaffine MLP heads
        "Wad": s * jax.random.normal(ks[5], (d_hid, d_arc), jnp.float32), "bad": z(d_arc),
        "Wah": s * jax.random.normal(ks[6], (d_hid, d_arc), jnp.float32), "bah": z(d_arc),
        "Wrd": s * jax.random.normal(ks[7], (d_hid, d_rel), jnp.float32), "brd": z(d_rel),
        "Wrh": s * jax.random.normal(ks[8], (d_hid, d_rel), jnp.float32), "brh": z(d_rel),
        # biaffine tensors (bias-augmented convention, decomposed at call time)
        "Uarc": s * jax.random.normal(ks[9], (1, d_arc + 1, d_arc + 1), jnp.float32),
        "Urel": s * jax.random.normal(ks[10], (n_rels, d_rel + 1, d_rel + 1), jnp.float32),
    }
    return p


# ----------------------------------- main -----------------------------------

if __name__ == "__main__":
    B, S, Lc = 2, 8, 4
    vocab, n_pos, n_rels = 32, 8, 4

    key = jax.random.PRNGKey(0)
    k_par, k_w, k_c, k_p, k_a, k_r = jax.random.split(key, 6)

    params = init_params(k_par, vocab, n_pos, n_rels)

    word = jax.random.randint(k_w, (B, S), 0, vocab, dtype=jnp.int32)
    char = jax.random.randint(k_c, (B, S, Lc), 0, 64, dtype=jnp.int32)
    pos = jax.random.randint(k_p, (B, S), 0, n_pos, dtype=jnp.int32)
    length = jnp.array([S, S - 2], dtype=jnp.int32)
    mask = (jnp.arange(S)[None, :] < length[:, None]).astype(jnp.float32)
    arcs = jax.random.randint(k_a, (B, S), 0, S, dtype=jnp.int32)
    rels = jax.random.randint(k_r, (B, S), 0, n_rels, dtype=jnp.int32)

    out = seq_all_obfuscator_forward(params, word, char, pos, mask, length,
                                     arcs=arcs, rels=rels)
    jax.block_until_ready(out["loss"])
    jax.block_until_ready(out["gen_oup"]["obf_word_emb"])

    assert out["loss"].shape == ()
    assert jnp.isfinite(out["loss"])
    print("KERNEL_OK")
</pallas_src>

<mosaic_0001>
module attributes {stable_mosaic.version = 11 : i64} {
  func.func @_generator_kernel(%arg0: i32, %arg1: memref<8x48xf32, #tpu.memory_space<vmem>>, %arg2: memref<48x32xf32, #tpu.memory_space<vmem>>, %arg3: memref<1x32xf32, #tpu.memory_space<vmem>>, %arg4: memref<32x32xbf16, #tpu.memory_space<vmem>>, %arg5: memref<1x32xf32, #tpu.memory_space<vmem>>, %arg6: memref<32x32xbf16, #tpu.memory_space<vmem>>, %arg7: memref<8x32xf32, #tpu.memory_space<vmem>>, %arg8: memref<8x1xi32, #tpu.memory_space<vmem>>, %arg9: memref<8x1xf32, #tpu.memory_space<vmem>>) attributes {dimension_semantics = [#tpu.dimension_semantics<parallel>], iteration_bounds = array<i64: 2>, scalar_prefetch = 0 : i64, scratch_operands = 0 : i64, tpu.core_type = #tpu.core_type<tc>, window_params = [{transform_indices = @transform_0, window_bounds = array<i64: 8, 48>}, {pipeline_mode = #tpu.pipeline_mode<synchronous>, transform_indices = @transform_1, window_bounds = array<i64: 48, 32>}, {pipeline_mode = #tpu.pipeline_mode<synchronous>, transform_indices = @transform_2, window_bounds = array<i64: 1, 32>}, {pipeline_mode = #tpu.pipeline_mode<synchronous>, transform_indices = @transform_3, window_bounds = array<i64: 32, 32>}, {pipeline_mode = #tpu.pipeline_mode<synchronous>, transform_indices = @transform_4, window_bounds = array<i64: 1, 32>}, {pipeline_mode = #tpu.pipeline_mode<synchronous>, transform_indices = @transform_5, window_bounds = array<i64: 32, 32>}, {transform_indices = @transform_6, window_bounds = array<i64: 8, 32>}, {transform_indices = @transform_7, window_bounds = array<i64: 8, 1>}, {transform_indices = @transform_8, window_bounds = array<i64: 8, 1>}]} {
    %c0 = arith.constant 0 : index
    %c0_0 = arith.constant 0 : index
    %0 = vector.load %arg1[%c0, %c0_0] : memref<8x48xf32, #tpu.memory_space<vmem>>, vector<8x48xf32>
    %c0_1 = arith.constant 0 : index
    %c0_2 = arith.constant 0 : index
    %1 = vector.load %arg2[%c0_1, %c0_2] : memref<48x32xf32, #tpu.memory_space<vmem>>, vector<48x32xf32>
    %cst = arith.constant dense<0.000000e+00> : vector<8x32xf32>
    %2 = tpu.matmul %0, %1, %cst {dimension_numbers = #tpu.dot_dimension_numbers<[1], [0], [0], [1], [0, 0, 1, 1], [], []>} : vector<8x48xf32>, vector<48x32xf32>, vector<8x32xf32> -> vector<8x32xf32>
    %c0_3 = arith.constant 0 : index
    %c0_4 = arith.constant 0 : index
    %3 = vector.load %arg3[%c0_3, %c0_4] : memref<1x32xf32, #tpu.memory_space<vmem>>, vector<1x32xf32>
    %4 = vector.broadcast %3 : vector<1x32xf32> to vector<8x32xf32>
    %5 = arith.addf %2, %4 : vector<8x32xf32>
    %6 = math.tanh %5 : vector<8x32xf32>
    %7 = arith.truncf %6 : vector<8x32xf32> to vector<8x32xbf16>
    %c0_5 = arith.constant 0 : index
    %c0_6 = arith.constant 0 : index
    %8 = vector.load %arg4[%c0_5, %c0_6] : memref<32x32xbf16, #tpu.memory_space<vmem>>, vector<32x32xbf16>
    %cst_7 = arith.constant dense<0.000000e+00> : vector<8x32xf32>
    %9 = tpu.matmul %7, %8, %cst_7 {dimension_numbers = #tpu.dot_dimension_numbers<[1], [0], [0], [1], [0, 0, 1, 1], [], []>} : vector<8x32xbf16>, vector<32x32xbf16>, vector<8x32xf32> -> vector<8x32xf32>
    %c0_8 = arith.constant 0 : index
    %c0_9 = arith.constant 0 : index
    %10 = vector.load %arg5[%c0_8, %c0_9] : memref<1x32xf32, #tpu.memory_space<vmem>>, vector<1x32xf32>
    %11 = vector.broadcast %10 : vector<1x32xf32> to vector<8x32xf32>
    %12 = arith.addf %9, %11 : vector<8x32xf32>
    %cst_10 = arith.constant dense<0xFF800000> : vector<8xf32>
    %13 = vector.multi_reduction <maximumf>, %12, %cst_10 [1] : vector<8x32xf32> to vector<8xf32>
    %14 = vector.shape_cast %13 : vector<8xf32> to vector<8x1xf32>
    %15 = vector.broadcast %14 : vector<8x1xf32> to vector<8x32xf32>
    %16 = arith.subf %12, %15 : vector<8x32xf32>
    %17 = math.exp %16 : vector<8x32xf32>
    %cst_11 = arith.constant dense<0.000000e+00> : vector<8xf32>
    %18 = vector.multi_reduction <add>, %17, %cst_11 [1] : vector<8x32xf32> to vector<8xf32>
    %19 = vector.shape_cast %18 : vector<8xf32> to vector<8x1xf32>
    %20 = vector.broadcast %19 : vector<8x1xf32> to vector<8x32xf32>
    %21 = arith.divf %17, %20 : vector<8x32xf32>
    %22 = arith.truncf %21 : vector<8x32xf32> to vector<8x32xbf16>
    %c0_12 = arith.constant 0 : index
    %c0_13 = arith.constant 0 : index
    %23 = vector.load %arg6[%c0_12, %c0_13] : memref<32x32xbf16, #tpu.memory_space<vmem>>, vector<32x32xbf16>
    %cst_14 = arith.constant dense<0.000000e+00> : vector<8x32xf32>
    %24 = tpu.matmul %22, %23, %cst_14 {dimension_numbers = #tpu.dot_dimension_numbers<[1], [0], [0], [1], [0, 0, 1, 1], [], []>} : vector<8x32xbf16>, vector<32x32xbf16>, vector<8x32xf32> -> vector<8x32xf32>
    %c0_15 = arith.constant 0 : index
    %c0_16 = arith.constant 0 : index
    %25 = vector.load %arg7[%c0_15, %c0_16] : memref<8x32xf32, #tpu.memory_space<vmem>>, vector<8x32xf32>
    tpu.vector_store %arg7[%c0_15, %c0_16], %24 {strides = array<i32>} : memref<8x32xf32, #tpu.memory_space<vmem>>, vector<8x32xf32>,
    %26 = tpu.iota {dimensions = array<i32: 1>} : vector<8x32xi32>
    %27 = arith.sitofp %26 : vector<8x32xi32> to vector<8x32xf32>
    %28 = vector.broadcast %14 : vector<8x1xf32> to vector<8x32xf32>
    %29 = arith.cmpf oeq, %12, %28 : vector<8x32xf32>
    %cst_17 = arith.constant 3.200000e+01 : f32
    %30 = vector.broadcast %cst_17 : f32 to vector<8x32xf32>
    %31 = arith.select %29, %27, %30 : vector<8x32xi1>, vector<8x32xf32>
    %cst_18 = arith.constant dense<0x7F800000> : vector<8xf32>
    %32 = vector.multi_reduction <minimumf>, %31, %cst_18 [1] : vector<8x32xf32> to vector<8xf32>
    %33 = vector.shape_cast %32 : vector<8xf32> to vector<8x1xf32>
    %34 = arith.fptosi %33 : vector<8x1xf32> to vector<8x1xi32>
    %c0_19 = arith.constant 0 : index
    %c0_20 = arith.constant 0 : index
    %35 = vector.load %arg8[%c0_19, %c0_20] : memref<8x1xi32, #tpu.memory_space<vmem>>, vector<8x1xi32>
    tpu.vector_store %arg8[%c0_19, %c0_20], %34 {strides = array<i32>} : memref<8x1xi32, #tpu.memory_space<vmem>>, vector<8x1xi32>,
    %36 = math.log %19 : vector<8x1xf32>
    %cst_21 = arith.constant 0.000000e+00 : f32
    %37 = vector.broadcast %cst_21 : f32 to vector<8x1xf32>
    %38 = arith.subf %37, %36 : vector<8x1xf32>
    %c0_22 = arith.constant 0 : index
    %c0_23 = arith.constant 0 : index
    %39 = vector.load %arg9[%c0_22, %c0_23] : memref<8x1xf32, #tpu.memory_space<vmem>>, vector<8x1xf32>
    tpu.vector_store %arg9[%c0_22, %c0_23], %38 {strides = array<i32>} : memref<8x1xf32, #tpu.memory_space<vmem>>, vector<8x1xf32>,
    return
  }
  func.func @transform_0(%arg0: i32) -> (i32, i32) {
    %c0_i32 = arith.constant 0 : i32
    %c0_i32_0 = arith.constant 0 : i32
    return %arg0, %c0_i32 : i32, i32
  }
  func.func @transform_1(%arg0: i32) -> (i32, i32) {
    %c0_i32 = arith.constant 0 : i32
    %c0_i32_0 = arith.constant 0 : i32
    %c0_i32_1 = arith.constant 0 : i32
    return %c0_i32, %c0_i32_0 : i32, i32
  }
  func.func @transform_2(%arg0: i32) -> (i32, i32) {
    %c0_i32 = arith.constant 0 : i32
    %c0_i32_0 = arith.constant 0 : i32
    %c0_i32_1 = arith.constant 0 : i32
    return %c0_i32, %c0_i32_0 : i32, i32
  }
  func.func @transform_3(%arg0: i32) -> (i32, i32) {
    %c0_i32 = arith.constant 0 : i32
    %c0_i32_0 = arith.constant 0 : i32
    %c0_i32_1 = arith.constant 0 : i32
    return %c0_i32, %c0_i32_0 : i32, i32
  }
  func.func @transform_4(%arg0: i32) -> (i32, i32) {
    %c0_i32 = arith.constant 0 : i32
    %c0_i32_0 = arith.constant 0 : i32
    %c0_i32_1 = arith.constant 0 : i32
    return %c0_i32, %c0_i32_0 : i32, i32
  }
  func.func @transform_5(%arg0: i32) -> (i32, i32) {
    %c0_i32 = arith.constant 0 : i32
    %c0_i32_0 = arith.constant 0 : i32
    %c0_i32_1 = arith.constant 0 : i32
    return %c0_i32, %c0_i32_0 : i32, i32
  }
  func.func @transform_6(%arg0: i32) -> (i32, i32) {
    %c0_i32 = arith.constant 0 : i32
    %c0_i32_0 = arith.constant 0 : i32
    return %arg0, %c0_i32 : i32, i32
  }
  func.func @transform_7(%arg0: i32) -> (i32, i32) {
    %c0_i32 = arith.constant 0 : i32
    %c0_i32_0 = arith.constant 0 : i32
    return %arg0, %c0_i32 : i32, i32
  }
  func.func @transform_8(%arg0: i32) -> (i32, i32) {
    %c0_i32 = arith.constant 0 : i32
    %c0_i32_0 = arith.constant 0 : i32
    return %arg0, %c0_i32 : i32, i32
  }
}

</mosaic_0001>

<bundles_post_ra>
// kernel: tpu_custom_call.1
= control target key start
LH: loop header
LB: loop body
LE: loop exit
PB: predicated region body
PF: predicated region fallthrough
CT: control target
= control target key end

     0   :  { %14 = vsyncpa [#allocation3], 0  ;;  %s1101_s0 = inlined_call_operand.vmem [shape: f32[16,48], index: 0, kind: input, shape index: {}]   ;;  %s1102_s1 = inlined_call_operand.vmem [shape: f32[48,32], index: 1, kind: input, shape index: {}]   ;;  %s1103_s2 = inlined_call_operand.vmem [shape: f32[1,32], index: 2, kind: input, shape index: {}]   ;;  %s1104_s3 = inlined_call_operand.vmem [shape: bf16[32,32], index: 3, kind: input, shape index: {}]   ;;  %s1105_s4 = inlined_call_operand.vmem [shape: f32[1,32], index: 4, kind: input, shape index: {}]   ;;  %s1106_s5 = inlined_call_operand.vmem [shape: bf16[32,32], index: 5, kind: input, shape index: {}]   ;;  %s1107_s6 = inlined_call_operand.hbm [shape: f32[16,32], index: 6, kind: output, shape index: {0}]   ;;  %s1108_s7 = inlined_call_operand.vmem [shape: s32[16,1], index: 7, kind: output, shape index: {1}]   ;;  %s1109_s8 = inlined_call_operand.vmem [shape: f32[16,1], index: 8, kind: output, shape index: {2}]  }
   0x1   :  { %16 = vsyncpa [#allocation3 + $0x1], 0  ;;  %s945_s27 = smov 0   ;;  %s947_s28 = smov 0  }
   0x2   :  { %s949_s29 = smov 0   ;;  %s951_s30 = smov 0  }
   0x3 LB: > { %s966_s9 = sadd.s32 4294967295, %s894_s30   ;;  %s702_s10 = sadd.s32 4294967294, %s894_s30   ;;  %s894_s30 = sphi %s951_s30, %s1115_s30   ;;  %s890_s29 = sphi %s949_s29, %s1114_s29   ;;  %s886_s28 = sphi %s947_s28, %s1113_s28   ;;  %s882_s27 = sphi %s945_s27, %s1112_s27  }
   0x4   : > { %s970_s11 = sadd.s32 1, %s894_s30   ;;  %s160_s12 = sadd.s32 1, %s890_s29 }
   0x5   : > { %s157_s13 = ssub.s32 %s894_s30, %s970_s11  ;;  %p170_p0 = scmp.ne.s32.totalorder %s890_s29, %s886_s28 }
   0x6   : > { %p158_p1 = scmp.eq.s32.totalorder %s157_s13, 0  ;;  %p171_p2 = scmp.eq.s32.totalorder %s966_s9, 1 }
   0x7   : > { %p176_p3 = scmp.ne.s32.totalorder %s886_s28, %s882_s27  ;;  %p177_p4 = scmp.eq.s32.totalorder %s702_s10, 1 }
   0x8   : > { %s981_s14 = scalar_select %p158_p1, %s890_s29, %s160_s12  }
   0x9   : > { %p983_p5 = por %p171_p2, %p170_p0  ;;  %p987_p6 = por %p177_p4, %p176_p3 }
   0xa   : > { %p705_p7 = scmp.ge.s32.totalorder %s894_s30, 1  ;;  %p269_p8 = scmp.lt.s32.totalorder %s894_s30, 3 }
   0xc   : > { %p270_p9 = pnand %p705_p7, %p269_p8 }
   0xd   : > { %v324_v0 = vld [vmem:[%s1102_s1] sm:$0xff] (!%p270_p9)  ;;  %v325_v1 = vld [vmem:[%s1102_s1 + $0x8] sm:$0xff] (!%p270_p9)  ;;  %v326_v2 = vld [vmem:[%s1102_s1 + $0x10] sm:$0xff] (!%p270_p9)  ;;  %v896_v3 = vmov (!%p270_p9), 0.0|0.0   ;;  %vm897_vm0 = vmmov (!%p270_p9), 0   ;;  %v898_v6 = vmov (!%p270_p9), 0.0   ;;  %v552_v27 = vlaneseq (!%p270_p9) }
   0xe   : > { %273 = sbr.rel (%p270_p9) target bundleno = 1011 (0x3f3), region = 44  ;;  %767 = vmatprep.subr.bf16.mxu0 (!%p270_p9), %v896_v3  ;;  %v768_v4 = vpack.c.bf16 (!%p270_p9), %v325_v1, %v324_v0  ;;  %v327_v5 = vld [vmem:[%s1102_s1 + $0x18] sm:$0xff] (!%p270_p9)  ;;  %748 = vmatprep.mubr.msk.f32.mxu0 (!%p270_p9), %vm897_vm0, %v898_v6  ;;  %p310_p10 = scmp.lt.s32.totalorder (!%p270_p9), %s966_s9, 1  ;;  %v328_v7 = vld [vmem:[%s1102_s1 + $0x20] sm:$0xff] (!%p270_p9)  ;;  %v329_v9 = vld [vmem:[%s1102_s1 + $0x28] sm:$0xff] (!%p270_p9)  ;;  %vm337_vm1 = vcmask (!%p270_p9), 392192  }
   0xf   : > { %751 = vmatprep.subr.bf16.mxu1 (!%p270_p9), %v898_v6  ;;  %755 = vmatprep.mubr.msk.bf16.mxu1 (!%p270_p9), %vm897_vm0, %v898_v6  ;;  %v771_v8 = vpack.c.bf16 (!%p270_p9), %v327_v5, %v326_v2  ;;  %v774_v10 = vpack.c.bf16 (!%p270_p9), %v329_v9, %v328_v7  ;;  %v820_v12 = vld [vmem:[%s1104_s3] sm:$0xff] (!%p270_p9)   ;;  %v821_v13 = vld [vmem:[%s1104_s3 + $0x8] sm:$0xff] (!%p270_p9)   ;;  %vm436_vm2 = vcmask (!%p270_p9), 261120   ;;  %v553_v28 = vand.u32 (!%p270_p9), 127, %v552_v27  ;;  %s295_s10 = sand.u32 (!%p270_p9), 1, %s886_s28  }
  0x10   : > { %769 = vmatpush3.bf16.msra.mxu0 (!%p270_p9), %v768_v4  ;;  %752 = vmatpush3.bf16.msra.mxu1 (!%p270_p9), %v820_v12  ;;  %v710_v14 = vld [vmem:[%s1103_s2] ss:$0 sm:$0xff] (!%p270_p9)  ;;  %v823_v38 = vld [vmem:[%s1106_s5 + $0x8] sm:$0xff] (!%p270_p9)   ;;  %vm561_vm4 = vcmask (!%p270_p9), 7168   ;;  %s706_s12 = sshll.u32 (!%p270_p9), %s295_s10, 3 }
  0x11   : > { %770 = vmatprep.subr.bf16.mxu0 (!%p270_p9), %v896_v3  ;;  %753 = vmatprep.subr.bf16.mxu1 (!%p270_p9), %v898_v6  ;;  %v712_v20 = vld [vmem:[%s1105_s4] ss:$0 sm:$0xff] (!%p270_p9)  ;;  %v554_v29 = vcvt.s32.f32 (!%p270_p9), %v553_v28  ;;  %s297_s18 = scalar_lea.vmem (!%p270_p9), [#allocation2], %s706_s12 }
  0x12   : > { %v822_v37 = vld [vmem:[%s1106_s5] sm:$0xff] (!%p270_p9)   ;;  %s589_s19 = sshll.u32 (!%p270_p9), %s297_s18, 4  ;;  %s1060_s19 = int_to_ptr.vmem [resolvable:$true] %s589_s19 }
  0x14   : > { %772 = vmatpush3.bf16.msra.mxu0 (!%p270_p9), %v771_v8  ;;  %754 = vmatpush3.bf16.msra.mxu1 (!%p270_p9), %v821_v13 }
  0x15   : > { %s311_s13 = scalar_select %p310_p10, %s966_s9, 1  ;;  %773 = vmatprep.subr.bf16.mxu0 %v896_v3  ;;  %759 = vmatprep.subr.bf16.mxu1 %v898_v6 }
  0x17   : > { %s1015_s17 = sshll.u32 %s311_s13, 3  ;;  %s720_s13 = sshll.u32 %s966_s9, 7 }
  0x18   : > { %s313_s20 = scalar_lea.vmem %s1101_s0, %s1015_s17  ;;  %775 = vmatpush3.bf16.msra.mxu0 %v774_v10  ;;  %s317_s23 = scalar_lea.vmem %s1108_s7, %s1015_s17 }
  0x19   : > { %v323_v11 = vld [vmem:[%s313_s20] sm:$0xff]  ;;  %s321_s26 = scalar_lea.vmem %s1109_s8, %s1015_s17  ;;  %s1058_s22 = scalar_lea.hbm %s1107_s6, %s720_s13 }
  0x1a   : > { %s568_s17 = scalar_lea.sflag [#allocation3], %s295_s10  ;;  %s899_s9 = smov [#allocation2]  }
  0x1b   : > { %749 = vmatmul.mubr.msk.f32.vlgmr.msra.gmra.mrb[0].mxu0 %vm337_vm1, %v323_v11  ;;  %s836_s24 = sshll.u32 %s899_s9, 4  ;;  %s837_s24 = int_to_ptr.vmem [resolvable:$false] %s836_s24 }
  0x1c   : > { %s838_s25 = scalar_lea.vmem %s837_s24, 256  ;;  %p839_p0 = scmp.lt.s32.totalorder %s1060_s19, %s837_s24 }
  0xee   : > { %v407_v15 = vpop.f32.mrb[0].mxu0 }
  0xef   : > { %v408_v16 = vadd.f32 %v710_v14, %v407_v15  ;;  %v750_v17 = vpop.f32.mrb[1].mxu0 }
  0xf1   : > { %824 = vtanh.f32 %v408_v16 }
  0xfb   : > { %v825_v18 = vpop.eup %824 }
  0xfc   : > { %v412_v19 = vpack.c.bf16 %v825_v18, %v825_v18 }
  0xfe   : > { %756 = vmatmul.mubr.msk.bf16.vlgmr.msra.gmra.mrb[0].mxu1 %vm436_vm2, %v412_v19 }
  0xff   : > { %763 = vmatprep.mubr.msk.bf16.mxu1 %vm897_vm0, %v898_v6  ;;  %760 = vmatpush3.bf16.msra.mxu1 %v822_v37 }
 0x100   : > { %761 = vmatprep.subr.bf16.mxu1 %v898_v6 }
 0x103   : > { %762 = vmatpush3.bf16.msra.mxu1 %v823_v38 }
 0x1d1   : > { %v474_v21 = vpop.f32.mrb[0].mxu1 }
 0x1d2   : > { %v475_v22 = vadd.f32 %v712_v20, %v474_v21  ;;  %v757_v23 = vpop.f32.mrb[1].mxu1 }
 0x1d3   : > { %v477_v24 = vpop.f32.mrb[2].mxu1 }
 0x1d4   : > { %v758_v25 = vpop.f32.mrb[3].mxu1  ;;  %v480_v26 = vsel %vm436_vm2, %v475_v22, -inf }
 0x1d5   : > { %481 = vmax.xlane.f32.xlu0 %v480_v26 }
 0x262   : > { %v482_v30 = vpop.xlane.xlu0 %481 }
 0x263   : > { %v483_v31 = vsub.f32 %v475_v22, %v482_v30  ;;  %vm555_vm3 = vcmp.eq.f32.partialorder %v475_v22, %v482_v30 }
 0x264   : > { %v556_v32 = vsel %vm555_vm3, %v554_v29, 32.0 }
 0x265   : > { %v484_v33 = vmul.f32 1.442695, %v483_v31  ;;  %v557_v34 = vsel %vm436_vm2, %v556_v32, inf }
 0x266   : > { %558 = vmin.xlane.f32.xlu1 %v557_v34 }
 0x267   : > { %826 = vpow2.f32 %v484_v33 }
 0x271   : > { %v827_v35 = vpop.eup %826 }
 0x272   : > { %v486_v36 = vsel %vm436_vm2, %v827_v35, 0.0 }
 0x273   : > { %487 = vadd.xlane.f32.xlu0 %v486_v36 }
 0x2f3   : > { %v559_v39 = vpop.xlane.xlu1 %558 }
 0x2f4   : > { %v776_v40 = vtrunc.f32 %v559_v39 }
 0x2f6   : > { %v777_v41 = vcvt.f32.s32 %v776_v40 }
 0x2f8   : > { %562 = vst.msk [vmem:[%s317_s23] sm:$0xff] %vm561_vm4, %v777_v41  ;;  %s832_s23 = scalar_lea.vmem %s1060_s19, 128 }
 0x2f9   : > { %p833_p11 = scmp.ne.s32.totalorder %s1060_s19, %s832_s23  ;;  %p840_p1 = scmp.lt.s32.totalorder %s838_s25, %s832_s23 }
 0x2fb   : > { %p834_p12 = pnand %p833_p11, %p983_p5  ;;  %p841_p2 = por %p840_p1, %p839_p0 }
 0x2fd   : > { %p835_p13 = pneg %p834_p12 }
 0x2ff   : > { %p842_p3 = pnand %p841_p2, %p835_p13 }
 0x300   : > { %v488_v42 = vpop.xlane.xlu0 %487 }
 0x301   : > { %828 = vrcp.f32 %v488_v42 }
 0x302   : > { %830 = vlog2.f32 %v488_v42 }
 0x30b   : > { %v829_v43 = vpop.eup %828 }
 0x30c   : > { %v831_v44 = vpop.eup %830  ;;  %v490_v45 = vmul.f32 %v829_v43, %v827_v35 }
 0x30d   : > { %v564_v46 = vmul.f32 0.6931472, %v831_v44 }
 0x30e   : > { %v491_v47 = vpack.c.bf16 %v490_v45, %v490_v45 }
 0x30f   : > { %v565_v48 = vsub.f32 0.0, %v564_v46 }
 0x310   : > { %764 = vmatmul.mubr.msk.bf16.vlgmr.msra.gmra.mrb[4].mxu1 %vm436_vm2, %v491_v47 }
 0x311   : > { %566 = vst.msk [vmem:[%s321_s26] sm:$0xff] %vm561_vm4, %v565_v48 }
 0x3e3   : > { %v545_v49 = vpop.f32.mrb[4].mxu1 }
 0x3e4   : > { %551 = vst.msk [vmem:[%s297_s18] sm:$0xff] %vm436_vm2, %v545_v49  ;;  %v765_v50 = vpop.f32.mrb[5].mxu1 }
 0x3e5   : > { %v548_v51 = vpop.f32.mrb[6].mxu1 }
 0x3e6   : > { %845 = shalt.err (!%p842_p3)
}
 0x3e7   : > { %s846_s26 = scalar_lea.hbm %s1058_s22, 128  ;;  %s850_s13 = scalar_lea.hbm %s1107_s6, 256 }
 0x3e8   : > { %p847_p4 = scmp.ne.s32.totalorder %s1058_s22, %s846_s26  ;;  %p851_p9 = scmp.lt.u32.totalorder %s1058_s22, %s1107_s6 }
 0x3e9   : > { %p852_p10 = scmp.lt.u32.totalorder %s850_s13, %s846_s26  ;;  %p854_p12 = scmp.lt.u32.totalorder %s846_s26, %s1058_s22 }
 0x3ea   : > { %p848_p7 = pnand %p847_p4, %p983_p5 }
 0x3eb   : > { %p853_p11 = por %p852_p10, %p851_p9 }
 0x3ec   : > { %p849_p8 = pneg %p848_p7 }
 0x3ed   : > { %p855_p13 = por %p854_p12, %p853_p11 }
 0x3ef   : > { %p856_p0 = pnand %p855_p13, %p849_p8 }
 0x3f1   : > { %859 = shalt.err (!%p856_p0)
}
 0x3f2   : > { %778 = dma.vmem_to_hbm [thread:$0]  (%p983_p5), %s1060_s19, 128, %s1058_s22, %s568_s17   ;;  %v766_v52 = vpop.f32.mrb[7].mxu1 }
 0x3f3 PF: > { %p784_p1 = scmp.ge.s32.totalorder %s894_s30, 2  ;;  %s607_s21 = sand.u32 1, %s882_s27  }
 0x3f4   : > { %s608_s23 = scalar_lea.sflag [#allocation3], %s607_s21 }
 0x3f5   : > { %p781_p2 = pnand %p784_p1, %p987_p6 }
 0x3f7   : > { %877 = dma.done.wait (!%p781_p2), %s608_s23, 128  }
 0x3f8   : > { %879 = vsyncadd (!%p781_p2), %s608_s23, 4294967168  ;;  %p19_p3 = scmp.ge.s32.totalorder %s970_s11, 4   ;;  %s1112_s27 = smov %s886_s28 }
 0x3f9   : > { %s1113_s28 = smov %s890_s29  ;;  %s1114_s29 = smov %s981_s14 }
 0x3fa   : > { %s1115_s30 = smov %s970_s11  ;;  %21 = sbr.rel (!%p19_p3) target bundleno = 3 (0x3), region = 103 }
 0x401   :  { %627 = vsyncpa [#allocation3], 1 }
 0x402   :  { %629 = vsyncpa [#allocation3 + $0x1], 1 }

</bundles_post_ra>
